<compile_context>
chip_gen: v7x
topology: tpu7x:2x2x1
jax: 0.10.0
libtpu: 0.0.40
codegen_flags: <defaults>
</compile_context>

<pallas_src>
import numpy as np
import jax
import jax.numpy as jnp
from jax.experimental import pallas as pl
from jax.experimental.pallas import tpu as pltpu

# IntervalNormalizationLayer bounds from the PyTorch module (__init__).
A_VALS = (0.4, 0.0, 0.5, 0.02, 0.005, 0.0001, 4.0)
B_VALS = (1.7, 280.0, 3.5, 0.1, 0.1, 0.25, 24.0)

NUM_PARAMS = 7          # num_parameters in the PyTorch model head
IN_FEATURES = 128       # fc1 input features (conv5 channels after global pool)
HIDDEN = 512            # fc1 output features
LANES = 128             # lane-dense padded output width
ROW_ALIGN = 16          # bf16 sublane tile (safe block alignment)
MAX_TM = 1024           # cap rows/block; well under VMEM on v5e/v6e/v7x


def _round_up(x, m):
    return ((x + m - 1) // m) * m


def _fc_head_kernel(x_ref, w1_ref, b1_ref, w2_ref, b2_ref,
                    scale_ref, off_ref, o_ref):
    # fc1 -> ReLU : bf16 MXU matmul, f32 accumulation, bias/ReLU in f32.
    h = jnp.dot(x_ref[...], w1_ref[...], preferred_element_type=jnp.float32)
    h = jnp.maximum(h + b1_ref[...], 0.0)
    # fc2 : cast activations back to bf16 so the 512-deep matmul runs at the
    # native bf16 MXU rate (output columns padded to 128 lanes, extra cols 0).
    y = jnp.dot(h.astype(jnp.bfloat16), w2_ref[...],
                preferred_element_type=jnp.float32) + b2_ref[...]
    # IntervalNormalizationLayer epilogue: sigmoid(y) * (b - a) + a with the
    # bounds pre-padded to (1, 128). exp + approx reciprocal keep it on EUP.
    sig = pl.reciprocal(1.0 + jnp.exp(-y), approx=True)
    o_ref[...] = sig * scale_ref[...] + off_ref[...]


def fc_head_interval_norm(feat, fc1_w, fc1_b, fc2_w, fc2_b):
    """Fused fc1 -> ReLU -> fc2 -> IntervalNormalizationLayer Pallas kernel.

    feat: (N, 128) f32. Returns (N, 7) f32.
    """
    n, in_f = feat.shape
    assert in_f == IN_FEATURES
    assert fc1_w.shape == (IN_FEATURES, HIDDEN)
    assert fc2_w.shape == (HIDDEN, NUM_PARAMS)

    # bf16 MXU inputs (weights + activations); biases / epilogue stay f32.
    w1_bf = fc1_w.astype(jnp.bfloat16)
    w2p = jnp.zeros((HIDDEN, LANES), jnp.bfloat16).at[:, :NUM_PARAMS].set(
        fc2_w.astype(jnp.bfloat16))
    b1r = fc1_b.astype(jnp.float32).reshape(1, HIDDEN)
    b2p = jnp.zeros((1, LANES), jnp.float32).at[0, :NUM_PARAMS].set(
        fc2_b.astype(jnp.float32))

    # Interval-norm bounds as lane-dense (1, 128) broadcast operands
    # (padded lanes get scale=offset=0 and are sliced off outside).
    scale_np = np.zeros((1, LANES), np.float32)
    scale_np[0, :NUM_PARAMS] = np.asarray(B_VALS) - np.asarray(A_VALS)
    off_np = np.zeros((1, LANES), np.float32)
    off_np[0, :NUM_PARAMS] = np.asarray(A_VALS)
    scale_p = jnp.asarray(scale_np)
    off_p = jnp.asarray(off_np)

    # Batch tiling: pad rows only to the 16-row tile; for non-trivial batches
    # aim for a >=2-step "parallel" grid (uses both v7x TCs, negligible extra
    # step cost on single-TC v5e/v6e); cap huge batches at MAX_TM rows/block.
    n_al = _round_up(max(n, 1), ROW_ALIGN)
    if n_al <= 2 * ROW_ALIGN:
        tm = n_al
    else:
        tm = min(MAX_TM, _round_up(-(-n_al // 2), ROW_ALIGN))
    grid_m = -(-n_al // tm)
    n_pad = grid_m * tm
    feat_p = jnp.pad(feat.astype(jnp.float32),
                     ((0, n_pad - n), (0, 0))).astype(jnp.bfloat16)

    cost = pl.CostEstimate(
        flops=2 * n_pad * (IN_FEATURES * HIDDEN + HIDDEN * LANES),
        transcendentals=n_pad * LANES,
        bytes_accessed=(2 * (n_pad * IN_FEATURES + IN_FEATURES * HIDDEN
                             + HIDDEN * LANES)
                        + 4 * (HIDDEN + 3 * LANES + n_pad * LANES)),
    )

    out = pl.pallas_call(
        _fc_head_kernel,
        out_shape=jax.ShapeDtypeStruct((n_pad, LANES), jnp.float32),
        grid=(grid_m,),
        in_specs=[
            pl.BlockSpec((tm, IN_FEATURES), lambda i: (i, 0)),
            pl.BlockSpec((IN_FEATURES, HIDDEN), lambda i: (0, 0)),
            pl.BlockSpec((1, HIDDEN), lambda i: (0, 0)),
            pl.BlockSpec((HIDDEN, LANES), lambda i: (0, 0)),
            pl.BlockSpec((1, LANES), lambda i: (0, 0)),
            pl.BlockSpec((1, LANES), lambda i: (0, 0)),
            pl.BlockSpec((1, LANES), lambda i: (0, 0)),
        ],
        out_specs=pl.BlockSpec((tm, LANES), lambda i: (i, 0)),
        compiler_params=pltpu.CompilerParams(
            dimension_semantics=("parallel",)),
        cost_estimate=cost,
    )(feat_p, w1_bf, b1r, w2p, b2p, scale_p, off_p)

    return out[:n, :NUM_PARAMS]


# ----------------------------- conv trunk (plain XLA) -----------------------


def _conv_bn_relu(x, w, b, bn, eps=1e-5):
    y = jax.lax.conv_general_dilated(
        x, w, window_strides=(1, 1, 1), padding=[(1, 1)] * 3,
        dimension_numbers=("NCDHW", "OIDHW", "NCDHW"))
    y = y + b.reshape(1, -1, 1, 1, 1)
    gamma, beta, mean, var = bn                       # eval-mode BatchNorm3d
    inv = (gamma / jnp.sqrt(var + eps)).reshape(1, -1, 1, 1, 1)
    y = (y - mean.reshape(1, -1, 1, 1, 1)) * inv + beta.reshape(1, -1, 1, 1, 1)
    return jnp.maximum(y, 0.0)


def _maxpool_1x2x2(x):
    return jax.lax.reduce_window(
        x, -jnp.inf, jax.lax.max,
        window_dimensions=(1, 1, 1, 2, 2),
        window_strides=(1, 1, 1, 2, 2),
        padding="VALID")


def conv_body(x, params):
    # TODO(synk): the Conv3d/BatchNorm3d/MaxPool3d/AdaptiveAvgPool3d trunk stays
    # in plain jax.lax ops (XLA) — no dedicated Pallas kernel at these tiny shapes.
    for idx, (w, b, bn) in enumerate(params["convs"]):
        x = _conv_bn_relu(x, w, b, bn)
        if idx < 4:                                   # conv1..conv4 are pooled
            x = _maxpool_1x2x2(x)
    return jnp.mean(x, axis=(2, 3, 4))                # AdaptiveAvgPool3d(1) + flatten


def new3dcnn_forward(x, params):
    feat = conv_body(x, params)                       # (B, 128)
    return fc_head_interval_norm(feat, params["fc1_w"], params["fc1_b"],
                                 params["fc2_w"], params["fc2_b"])


def head_reference(feat, fc1_w, fc1_b, fc2_w, fc2_b):
    h = jnp.maximum(feat @ fc1_w + fc1_b, 0.0)
    y = h @ fc2_w + fc2_b
    a = jnp.asarray(A_VALS, jnp.float32)
    b = jnp.asarray(B_VALS, jnp.float32)
    return jax.nn.sigmoid(y) * (b - a) + a


def init_params(key):
    chans = [3, 8, 16, 32, 64, 128]
    keys = jax.random.split(key, 2 * (len(chans) - 1) + 4)
    convs, ki = [], 0
    for cin, cout in zip(chans[:-1], chans[1:]):
        w = jax.random.normal(keys[ki], (cout, cin, 3, 3, 3), jnp.float32)
        w = w * (0.3 / (cin * 27) ** 0.5)
        b = jax.random.normal(keys[ki + 1], (cout,), jnp.float32) * 0.01
        ki += 2
        bn = (jnp.ones((cout,), jnp.float32), jnp.zeros((cout,), jnp.float32),
              jnp.zeros((cout,), jnp.float32), jnp.ones((cout,), jnp.float32))
        convs.append((w, b, bn))
    fc1_w = jax.random.normal(keys[ki], (IN_FEATURES, HIDDEN), jnp.float32)
    fc1_w = fc1_w * (1.0 / IN_FEATURES ** 0.5)
    fc1_b = jax.random.normal(keys[ki + 1], (HIDDEN,), jnp.float32) * 0.01
    fc2_w = jax.random.normal(keys[ki + 2], (HIDDEN, NUM_PARAMS), jnp.float32)
    fc2_w = fc2_w * (1.0 / HIDDEN ** 0.5)
    fc2_b = jax.random.normal(keys[ki + 3], (NUM_PARAMS,), jnp.float32) * 0.01
    return {"convs": convs, "fc1_w": fc1_w, "fc1_b": fc1_b,
            "fc2_w": fc2_w, "fc2_b": fc2_b}


if __name__ == "__main__":
    key = jax.random.PRNGKey(0)
    k_in, k_param, k_feat = jax.random.split(key, 3)

    params = init_params(k_param)
    # NEW3DCNN input: (batch=2, channels=3, depth=8, height=16, width=16)
    x = jax.random.normal(k_in, (2, 3, 8, 16, 16), jnp.float32)

    out = jax.block_until_ready(new3dcnn_forward(x, params))
    assert out.shape == (2, NUM_PARAMS) and out.dtype == jnp.float32

    param_range = jnp.asarray(B_VALS, jnp.float32) - jnp.asarray(A_VALS, jnp.float32)
    # bf16 MXU inputs + approx reciprocal: slightly looser tolerance than pure f32.
    TOL = 2.5e-2

    # Check the fused Pallas head against a pure-JAX f32 reference on real features.
    feat = conv_body(x, params)
    got = fc_head_interval_norm(feat, params["fc1_w"], params["fc1_b"],
                                params["fc2_w"], params["fc2_b"])
    ref = head_reference(feat, params["fc1_w"], params["fc1_b"],
                         params["fc2_w"], params["fc2_b"])
    err = float(jnp.max(jnp.abs(got - ref) / param_range))
    assert err < TOL, f"head mismatch vs reference: {err}"

    # Larger batch exercises the tiled (grid >= 2, parallel), padded path.
    feat2 = jax.random.normal(k_feat, (300, IN_FEATURES), jnp.float32) * 0.5
    got2 = fc_head_interval_norm(feat2, params["fc1_w"], params["fc1_b"],
                                 params["fc2_w"], params["fc2_b"])
    ref2 = head_reference(feat2, params["fc1_w"], params["fc1_b"],
                          params["fc2_w"], params["fc2_b"])
    jax.block_until_ready(got2)
    err2 = float(jnp.max(jnp.abs(got2 - ref2) / param_range))
    assert got2.shape == (300, NUM_PARAMS)
    assert err2 < TOL, f"tiled head mismatch vs reference: {err2}"

    print("KERNEL_OK")
</pallas_src>

<mosaic_0001>
module attributes {stable_mosaic.version = 11 : i64} {
  func.func @_fc_head_kernel(%arg0: i32, %arg1: memref<16x128xbf16, #tpu.memory_space<vmem>>, %arg2: memref<128x512xbf16, #tpu.memory_space<vmem>>, %arg3: memref<1x512xf32, #tpu.memory_space<vmem>>, %arg4: memref<512x128xbf16, #tpu.memory_space<vmem>>, %arg5: memref<1x128xf32, #tpu.memory_space<vmem>>, %arg6: memref<1x128xf32, #tpu.memory_space<vmem>>, %arg7: memref<1x128xf32, #tpu.memory_space<vmem>>, %arg8: memref<16x128xf32, #tpu.memory_space<vmem>>) attributes {dimension_semantics = [#tpu.dimension_semantics<parallel>], iteration_bounds = array<i64: 1>, scalar_prefetch = 0 : i64, scratch_operands = 0 : i64, tpu.core_type = #tpu.core_type<tc>, window_params = [{transform_indices = @transform_0, window_bounds = array<i64: 16, 128>}, {pipeline_mode = #tpu.pipeline_mode<synchronous>, transform_indices = @transform_1, window_bounds = array<i64: 128, 512>}, {pipeline_mode = #tpu.pipeline_mode<synchronous>, transform_indices = @transform_2, window_bounds = array<i64: 1, 512>}, {pipeline_mode = #tpu.pipeline_mode<synchronous>, transform_indices = @transform_3, window_bounds = array<i64: 512, 128>}, {pipeline_mode = #tpu.pipeline_mode<synchronous>, transform_indices = @transform_4, window_bounds = array<i64: 1, 128>}, {pipeline_mode = #tpu.pipeline_mode<synchronous>, transform_indices = @transform_5, window_bounds = array<i64: 1, 128>}, {pipeline_mode = #tpu.pipeline_mode<synchronous>, transform_indices = @transform_6, window_bounds = array<i64: 1, 128>}, {transform_indices = @transform_7, window_bounds = array<i64: 16, 128>}]} {
    %c0 = arith.constant 0 : index
    %c0_0 = arith.constant 0 : index
    %0 = vector.load %arg1[%c0, %c0_0] : memref<16x128xbf16, #tpu.memory_space<vmem>>, vector<16x128xbf16>
    %c0_1 = arith.constant 0 : index
    %c0_2 = arith.constant 0 : index
    %1 = vector.load %arg2[%c0_1, %c0_2] : memref<128x512xbf16, #tpu.memory_space<vmem>>, vector<128x512xbf16>
    %cst = arith.constant dense<0.000000e+00> : vector<16x512xf32>
    %2 = tpu.matmul %0, %1, %cst {dimension_numbers = #tpu.dot_dimension_numbers<[1], [0], [0], [1], [0, 0, 1, 1], [], []>} : vector<16x128xbf16>, vector<128x512xbf16>, vector<16x512xf32> -> vector<16x512xf32>
    %c0_3 = arith.constant 0 : index
    %c0_4 = arith.constant 0 : index
    %3 = vector.load %arg3[%c0_3, %c0_4] : memref<1x512xf32, #tpu.memory_space<vmem>>, vector<1x512xf32>
    %4 = vector.broadcast %3 : vector<1x512xf32> to vector<16x512xf32>
    %5 = arith.addf %2, %4 : vector<16x512xf32>
    %cst_5 = arith.constant 0.000000e+00 : f32
    %6 = vector.broadcast %cst_5 : f32 to vector<16x512xf32>
    %7 = arith.maximumf %5, %6 : vector<16x512xf32>
    %8 = arith.truncf %7 : vector<16x512xf32> to vector<16x512xbf16>
    %c0_6 = arith.constant 0 : index
    %c0_7 = arith.constant 0 : index
    %9 = vector.load %arg4[%c0_6, %c0_7] : memref<512x128xbf16, #tpu.memory_space<vmem>>, vector<512x128xbf16>
    %cst_8 = arith.constant dense<0.000000e+00> : vector<16x128xf32>
    %10 = tpu.matmul %8, %9, %cst_8 {dimension_numbers = #tpu.dot_dimension_numbers<[1], [0], [0], [1], [0, 0, 1, 1], [], []>} : vector<16x512xbf16>, vector<512x128xbf16>, vector<16x128xf32> -> vector<16x128xf32>
    %c0_9 = arith.constant 0 : index
    %c0_10 = arith.constant 0 : index
    %11 = vector.load %arg5[%c0_9, %c0_10] : memref<1x128xf32, #tpu.memory_space<vmem>>, vector<1x128xf32>
    %12 = vector.broadcast %11 : vector<1x128xf32> to vector<16x128xf32>
    %13 = arith.addf %10, %12 : vector<16x128xf32>
    %cst_11 = arith.constant 0.000000e+00 : f32
    %14 = vector.broadcast %cst_11 : f32 to vector<16x128xf32>
    %15 = arith.subf %14, %13 : vector<16x128xf32>
    %16 = math.exp %15 : vector<16x128xf32>
    %cst_12 = arith.constant 1.000000e+00 : f32
    %17 = vector.broadcast %cst_12 : f32 to vector<16x128xf32>
    %18 = arith.addf %17, %16 : vector<16x128xf32>
    %19 = tpu.reciprocal %18 {approx = true} : vector<16x128xf32> -> vector<16x128xf32>
    %c0_13 = arith.constant 0 : index
    %c0_14 = arith.constant 0 : index
    %20 = vector.load %arg6[%c0_13, %c0_14] : memref<1x128xf32, #tpu.memory_space<vmem>>, vector<1x128xf32>
    %21 = vector.broadcast %20 : vector<1x128xf32> to vector<16x128xf32>
    %22 = arith.mulf %19, %21 : vector<16x128xf32>
    %c0_15 = arith.constant 0 : index
    %c0_16 = arith.constant 0 : index
    %23 = vector.load %arg7[%c0_15, %c0_16] : memref<1x128xf32, #tpu.memory_space<vmem>>, vector<1x128xf32>
    %24 = vector.broadcast %23 : vector<1x128xf32> to vector<16x128xf32>
    %25 = arith.addf %22, %24 : vector<16x128xf32>
    %c0_17 = arith.constant 0 : index
    %c0_18 = arith.constant 0 : index
    %26 = vector.load %arg8[%c0_17, %c0_18] : memref<16x128xf32, #tpu.memory_space<vmem>>, vector<16x128xf32>
    tpu.vector_store %arg8[%c0_17, %c0_18], %25 {strides = array<i32>} : memref<16x128xf32, #tpu.memory_space<vmem>>, vector<16x128xf32>,
    return
  }
  func.func @transform_0(%arg0: i32) -> (i32, i32) {
    %c0_i32 = arith.constant 0 : i32
    %c0_i32_0 = arith.constant 0 : i32
    return %arg0, %c0_i32 : i32, i32
  }
  func.func @transform_1(%arg0: i32) -> (i32, i32) {
    %c0_i32 = arith.constant 0 : i32
    %c0_i32_0 = arith.constant 0 : i32
    %c0_i32_1 = arith.constant 0 : i32
    return %c0_i32, %c0_i32_0 : i32, i32
  }
  func.func @transform_2(%arg0: i32) -> (i32, i32) {
    %c0_i32 = arith.constant 0 : i32
    %c0_i32_0 = arith.constant 0 : i32
    %c0_i32_1 = arith.constant 0 : i32
    return %c0_i32, %c0_i32_0 : i32, i32
  }
  func.func @transform_3(%arg0: i32) -> (i32, i32) {
    %c0_i32 = arith.constant 0 : i32
    %c0_i32_0 = arith.constant 0 : i32
    %c0_i32_1 = arith.constant 0 : i32
    return %c0_i32, %c0_i32_0 : i32, i32
  }
  func.func @transform_4(%arg0: i32) -> (i32, i32) {
    %c0_i32 = arith.constant 0 : i32
    %c0_i32_0 = arith.constant 0 : i32
    %c0_i32_1 = arith.constant 0 : i32
    return %c0_i32, %c0_i32_0 : i32, i32
  }
  func.func @transform_5(%arg0: i32) -> (i32, i32) {
    %c0_i32 = arith.constant 0 : i32
    %c0_i32_0 = arith.constant 0 : i32
    %c0_i32_1 = arith.constant 0 : i32
    return %c0_i32, %c0_i32_0 : i32, i32
  }
  func.func @transform_6(%arg0: i32) -> (i32, i32) {
    %c0_i32 = arith.constant 0 : i32
    %c0_i32_0 = arith.constant 0 : i32
    %c0_i32_1 = arith.constant 0 : i32
    return %c0_i32, %c0_i32_0 : i32, i32
  }
  func.func @transform_7(%arg0: i32) -> (i32, i32) {
    %c0_i32 = arith.constant 0 : i32
    %c0_i32_0 = arith.constant 0 : i32
    return %arg0, %c0_i32 : i32, i32
  }
}

</mosaic_0001>

<bundles_post_ra>
// kernel: tpu_custom_call.1
= control target key start
LH: loop header
LB: loop body
LE: loop exit
PB: predicated region body
PF: predicated region fallthrough
CT: control target
= control target key end

     0   :  { %12 = vsyncpa [#allocation3], 0  ;;  %s1199_s0 = inlined_call_operand.hbm [shape: bf16[16,128], index: 0, kind: input, shape index: {}]   ;;  %s1200_s1 = inlined_call_operand.hbm [shape: bf16[128,512], index: 1, kind: input, shape index: {}]   ;;  %s1201_s2 = inlined_call_operand.vmem [shape: f32[1,512], index: 2, kind: input, shape index: {}]   ;;  %s1202_s3 = inlined_call_operand.hbm [shape: bf16[512,128], index: 3, kind: input, shape index: {}]   ;;  %s1203_s4 = inlined_call_operand.vmem [shape: f32[1,128], index: 4, kind: input, shape index: {}]   ;;  %s1204_s5 = inlined_call_operand.vmem [shape: f32[1,128], index: 5, kind: input, shape index: {}]   ;;  %s1205_s6 = inlined_call_operand.vmem [shape: f32[1,128], index: 6, kind: input, shape index: {}]   ;;  %s1206_s7 = inlined_call_operand.hbm [shape: f32[16,128], index: 7, kind: output, shape index: {}]  }
   0x1   :  { %13 = vsyncpa [#allocation6], 0 }
   0x2   :  { %14 = vsyncpa [#allocation4], 0  ;;  %s1088_s24 = smov [#allocation5]   ;;  %s994_s28 = scalar_lea.hbm %s1200_s1, 4096 }
   0x3   :  { %s32_s25 = sshll.u32 %s1088_s24, 4  ;;  %p995_p0 = scmp.ne.s32.totalorder %s1200_s1, %s994_s28  ;;  %s33_s25 = int_to_ptr.vmem [resolvable:$true] %s32_s25 }
   0x4   :  { %p998_p1 = scmp.lt.u32.totalorder %s994_s28, %s1200_s1 }
   0x6   :  { %p1000_p2 = pnand %p998_p1, %p995_p0 }
   0x8   :  { %1003 = shalt.err (!%p1000_p2)
}
   0x9   :  { %s1004_s10 = scalar_lea.vmem %s33_s25, 4096  ;;  %p1009_p4 = scmp.lt.s32.totalorder %s33_s25, %s33_s25 }
   0xa   :  { %p1005_p3 = scmp.ne.s32.totalorder %s33_s25, %s1004_s10  ;;  %p1010_p5 = scmp.lt.s32.totalorder %s1004_s10, %s1004_s10 }
   0xc   :  { %p1011_p6 = por %p1010_p5, %p1009_p4 }
   0xe   :  { %p1012_p7 = pnand %p1011_p6, %p1005_p3 }
  0x10   :  { %1015 = shalt.err (!%p1012_p7)
}
  0x11   :  { %s1089_s11 = smov 256   ;;  %s1090_s12 = smov 16  }
  0x12   :  { %38 = dma.hbm_to_vmem [thread:$0]  %s1200_s1, 4096, %s33_s25, [#allocation6], %s1089_s11, %s1089_s11, %s1090_s12  }
  0x13   :  { %s1091_s15 = smov [#allocation2]   ;;  %s1016_s19 = scalar_lea.hbm %s1199_s0, 128 }
  0x14   :  { %s20_s16 = sshll.u32 %s1091_s15, 4  ;;  %p1017_p8 = scmp.ne.s32.totalorder %s1199_s0, %s1016_s19  ;;  %s21_s16 = int_to_ptr.vmem [resolvable:$true] %s20_s16 }
  0x15   :  { %p1020_p9 = scmp.lt.u32.totalorder %s1016_s19, %s1199_s0 }
  0x17   :  { %p1022_p10 = pnand %p1020_p9, %p1017_p8 }
  0x19   :  { %1025 = shalt.err (!%p1022_p10)
}
  0x1a   :  { %s1026_s24 = scalar_lea.vmem %s21_s16, 128  ;;  %p1031_p12 = scmp.lt.s32.totalorder %s21_s16, %s21_s16 }
  0x1b   :  { %p1027_p11 = scmp.ne.s32.totalorder %s21_s16, %s1026_s24  ;;  %p1032_p13 = scmp.lt.s32.totalorder %s1026_s24, %s1026_s24 }
  0x1d   :  { %p1033_p0 = por %p1032_p13, %p1031_p12 }
  0x1f   :  { %p1034_p1 = pnand %p1033_p0, %p1027_p11 }
  0x21   :  { %1037 = shalt.err (!%p1034_p1)
}
  0x22   :  { %s1092_s1 = smov 64   ;;  %s1093_s25 = smov 4  }
  0x23   :  { %26 = dma.hbm_to_vmem [thread:$0]  %s1199_s0, 128, %s21_s16, [#allocation3], %s1092_s1, %s1092_s1, %s1093_s25  }
  0x24   :  { %s1094_s28 = smov [#allocation7]   ;;  %s1038_s9 = scalar_lea.hbm %s1202_s3, 4096 }
  0x25   :  { %s46_s29 = sshll.u32 %s1094_s28, 4  ;;  %p1039_p2 = scmp.ne.s32.totalorder %s1202_s3, %s1038_s9  ;;  %s47_s29 = int_to_ptr.vmem [resolvable:$true] %s46_s29 }
  0x26   :  { %p1042_p3 = scmp.lt.u32.totalorder %s1038_s9, %s1202_s3 }
  0x28   :  { %p1044_p4 = pnand %p1042_p3, %p1039_p2 }
  0x2a   :  { %1047 = shalt.err (!%p1044_p4)
}
  0x2b   :  { %s1048_s14 = scalar_lea.vmem %s47_s29, 4096  ;;  %p1053_p6 = scmp.lt.s32.totalorder %s47_s29, %s47_s29 }
  0x2c   :  { %p1049_p5 = scmp.ne.s32.totalorder %s47_s29, %s1048_s14  ;;  %p1054_p7 = scmp.lt.s32.totalorder %s1048_s14, %s1048_s14 }
  0x2e   :  { %p1055_p8 = por %p1054_p7, %p1053_p6 }
  0x30   :  { %p1056_p9 = pnand %p1055_p8, %p1049_p5 }
  0x32   :  { %1059 = shalt.err (!%p1056_p9)
}
  0x33   :  { %52 = dma.hbm_to_vmem [thread:$0]  %s1202_s3, 4096, %s47_s29, [#allocation6], %s1092_s1, %s1092_s1, %s1093_s25  }
  0x34   :  { %1082 = dma.done.wait [#allocation3], 128  }
  0x35   :  { %1083 = vsyncadd [#allocation3], 4294967168 }
  0x36   :  { %1084 = dma.done.wait [#allocation6], 8192  }
  0x37   :  { %1085 = vsyncadd [#allocation6], 4294959104  ;;  %v1095_v0 = vmov 0   ;;  %v905_v1 = vld [vmem:[#allocation5 + $0x4] ss:$16 sps:$4 sm:$0xff]   ;;  %v953_v34 = vld [vmem:[#allocation2] sm:$0xff]  }
  0x38   :  { %323 = vmatprep.mubr.bf16.mxu0 %v1095_v0  ;;  %366 = vmatprep.mubr.bf16.mxu1 %v1095_v0  ;;  %v907_v2 = vld [vmem:[#allocation5 + $0xc] ss:$16 sps:$4 sm:$0xff]   ;;  %v909_v3 = vld [vmem:[#allocation5] ss:$16 sps:$4 sm:$0xff]   ;;  %v910_v4 = vld [vmem:[#allocation5 + $0x8] ss:$16 sps:$4 sm:$0xff]  }
  0x39   :  { %291 = vmatprep.subr.bf16.mxu0 %v905_v1  ;;  %334 = vmatprep.subr.bf16.mxu1 %v907_v2  ;;  %v911_v5 = vld [vmem:[#allocation5 + $0x24] ss:$16 sps:$4 sm:$0xff]   ;;  %v913_v6 = vld [vmem:[#allocation5 + $0x2c] ss:$16 sps:$4 sm:$0xff]   ;;  %v915_v7 = vld [vmem:[#allocation5 + $0x20] ss:$16 sps:$4 sm:$0xff]   ;;  %v105_v2 = vlaneseq }
  0x3a   :  { %292 = vmatpush1.bf16.msra.mxu0 %v909_v3  ;;  %335 = vmatpush1.bf16.msra.mxu1 %v910_v4  ;;  %v916_v8 = vld [vmem:[#allocation5 + $0x28] ss:$16 sps:$4 sm:$0xff]   ;;  %v917_v9 = vld [vmem:[#allocation5 + $0x44] ss:$16 sps:$4 sm:$0xff]   ;;  %v919_v10 = vld [vmem:[#allocation5 + $0x4c] ss:$16 sps:$4 sm:$0xff]  }
  0x3b   :  { %293 = vmatprep.subr.bf16.mxu0 %v911_v5  ;;  %336 = vmatprep.subr.bf16.mxu1 %v913_v6  ;;  %v921_v11 = vld [vmem:[#allocation5 + $0x40] ss:$16 sps:$4 sm:$0xff]   ;;  %v922_v12 = vld [vmem:[#allocation5 + $0x48] ss:$16 sps:$4 sm:$0xff]   ;;  %v923_v13 = vld [vmem:[#allocation5 + $0x64] ss:$16 sps:$4 sm:$0xff]  }
  0x3c   :  { %v925_v14 = vld [vmem:[#allocation5 + $0x6c] ss:$16 sps:$4 sm:$0xff]   ;;  %v927_v15 = vld [vmem:[#allocation5 + $0x60] ss:$16 sps:$4 sm:$0xff]   ;;  %v928_v16 = vld [vmem:[#allocation5 + $0x68] ss:$16 sps:$4 sm:$0xff]  }
  0x3d   :  { %v929_v17 = vld [vmem:[#allocation5 + $0x84] ss:$16 sps:$4 sm:$0xff]   ;;  %v931_v18 = vld [vmem:[#allocation5 + $0x8c] ss:$16 sps:$4 sm:$0xff]   ;;  %v933_v19 = vld [vmem:[#allocation5 + $0x80] ss:$16 sps:$4 sm:$0xff]  }
  0x3e   :  { %294 = vmatpush1.bf16.msra.mxu0 %v915_v7  ;;  %337 = vmatpush1.bf16.msra.mxu1 %v916_v8  ;;  %v934_v20 = vld [vmem:[#allocation5 + $0x88] ss:$16 sps:$4 sm:$0xff]   ;;  %v935_v21 = vld [vmem:[#allocation5 + $0xa4] ss:$16 sps:$4 sm:$0xff]   ;;  %v937_v22 = vld [vmem:[#allocation5 + $0xac] ss:$16 sps:$4 sm:$0xff]  }
  0x3f   :  { %295 = vmatprep.subr.bf16.mxu0 %v917_v9  ;;  %338 = vmatprep.subr.bf16.mxu1 %v919_v10  ;;  %v939_v23 = vld [vmem:[#allocation5 + $0xa0] ss:$16 sps:$4 sm:$0xff]   ;;  %v940_v24 = vld [vmem:[#allocation5 + $0xa8] ss:$16 sps:$4 sm:$0xff]   ;;  %v941_v25 = vld [vmem:[#allocation5 + $0xc4] ss:$16 sps:$4 sm:$0xff]  }
  0x40   :  { %v943_v26 = vld [vmem:[#allocation5 + $0xcc] ss:$16 sps:$4 sm:$0xff]   ;;  %v945_v27 = vld [vmem:[#allocation5 + $0xc0] ss:$16 sps:$4 sm:$0xff]   ;;  %v946_v28 = vld [vmem:[#allocation5 + $0xc8] ss:$16 sps:$4 sm:$0xff]  }
  0x41   :  { %v947_v29 = vld [vmem:[#allocation5 + $0xe4] ss:$16 sps:$4 sm:$0xff]   ;;  %v949_v30 = vld [vmem:[#allocation5 + $0xec] ss:$16 sps:$4 sm:$0xff]   ;;  %v951_v31 = vld [vmem:[#allocation5 + $0xe0] ss:$16 sps:$4 sm:$0xff]  }
  0x42   :  { %296 = vmatpush1.bf16.msra.mxu0 %v921_v11  ;;  %339 = vmatpush1.bf16.msra.mxu1 %v922_v12  ;;  %v952_v32 = vld [vmem:[#allocation5 + $0xe8] ss:$16 sps:$4 sm:$0xff]   ;;  %v954_v33 = vld [vmem:[#allocation7 + $0x40] sm:$0xff]   ;;  %v962_v42 = vld [vmem:[#allocation7 + $0x50] sm:$0xff]   ;;  %v106_v3 = vshrl.u32 %v105_v2, 7  ;;  %s1096_s21 = smov [#allocation8]  }
  0x43   :  { %297 = vmatprep.subr.bf16.mxu0 %v923_v13  ;;  %340 = vmatprep.subr.bf16.mxu1 %v925_v14  ;;  %v955_v35 = vld [vmem:[#allocation7 + $0xc0] sm:$0xff]   ;;  %v958_v38 = vld [vmem:[#allocation7 + $0x48] sm:$0xff]   ;;  %v963_v43 = vld [vmem:[#allocation7 + $0xd0] sm:$0xff]   ;;  %s769_s22 = sshll.u32 %s1096_s21, 4  ;;  %s770_s22 = int_to_ptr.vmem [resolvable:$true] %s769_s22 }
  0x44   :  { %v956_v36 = vld [vmem:[#allocation7] sm:$0xff]   ;;  %v959_v39 = vld [vmem:[#allocation7 + $0xc8] sm:$0xff]   ;;  %v964_v44 = vld [vmem:[#allocation7 + $0x10] sm:$0xff]   ;;  %v107_v4 = vsub.s32 0, %v106_v3  ;;  %v115_v5 = vsub.s32 2, %v106_v3  ;;  %v111_v7 = vsub.s32 1, %v106_v3  ;;  %p1065_p11 = scmp.lt.s32.totalorder %s770_s22, %s770_s22 }
  0x45   :  { %v957_v37 = vld [vmem:[#allocation7 + $0x80] sm:$0xff]   ;;  %v960_v40 = vld [vmem:[#allocation7 + $0x8] sm:$0xff]   ;;  %v965_v45 = vld [vmem:[#allocation7 + $0x90] sm:$0xff]   ;;  %v119_v8 = vsub.s32 3, %v106_v3  ;;  %s1060_s23 = scalar_lea.vmem %s770_s22, 256 }
  0x46   :  { %298 = vmatpush1.bf16.msra.mxu0 %v927_v15  ;;  %341 = vmatpush1.bf16.msra.mxu1 %v928_v16  ;;  %v961_v41 = vld [vmem:[#allocation7 + $0x88] sm:$0xff]   ;;  %v966_v46 = vld [vmem:[#allocation7 + $0x58] sm:$0xff]   ;;  %v970_v50 = vld [vmem:[#allocation7 + $0x60] sm:$0xff]   ;;  %p1061_p10 = scmp.ne.s32.totalorder %s770_s22, %s1060_s23  ;;  %p1066_p12 = scmp.lt.s32.totalorder %s1060_s23, %s1060_s23 }
  0x47   :  { %299 = vmatprep.subr.bf16.mxu0 %v929_v17  ;;  %342 = vmatprep.subr.bf16.mxu1 %v931_v18  ;;  %v967_v47 = vld [vmem:[#allocation7 + $0xd8] sm:$0xff]   ;;  %v971_v51 = vld [vmem:[#allocation7 + $0xe0] sm:$0xff]   ;;  %v974_v54 = vld [vmem:[#allocation7 + $0x68] sm:$0xff]  }
  0x48   :  { %v968_v48 = vld [vmem:[#allocation7 + $0x18] sm:$0xff]   ;;  %v972_v52 = vld [vmem:[#allocation7 + $0x20] sm:$0xff]   ;;  %v975_v55 = vld [vmem:[#allocation7 + $0xe8] sm:$0xff]   ;;  %p1067_p13 = por %p1066_p12, %p1065_p11 }
  0x49   :  { %v969_v49 = vld [vmem:[#allocation7 + $0x98] sm:$0xff]   ;;  %v973_v53 = vld [vmem:[#allocation7 + $0xa0] sm:$0xff]   ;;  %v976_v56 = vld [vmem:[#allocation7 + $0x28] sm:$0xff]  }
  0x4a   :  { %300 = vmatpush1.bf16.msra.mxu0 %v933_v19  ;;  %343 = vmatpush1.bf16.msra.mxu1 %v934_v20  ;;  %v977_v57 = vld [vmem:[#allocation7 + $0xa8] sm:$0xff]   ;;  %v978_v58 = vld [vmem:[#allocation7 + $0x70] sm:$0xff]   ;;  %v982_v62 = vld [vmem:[#allocation7 + $0x78] sm:$0xff]   ;;  %p1068_p0 = pnand %p1067_p13, %p1061_p10 }
  0x4b   :  { %301 = vmatprep.subr.bf16.mxu0 %v935_v21  ;;  %344 = vmatprep.subr.bf16.mxu1 %v937_v22  ;;  %v979_v59 = vld [vmem:[#allocation7 + $0xf0] sm:$0xff]   ;;  %v983_v63 = vld [vmem:[#allocation7 + $0xf8] sm:$0xff]  }
  0x4c   :  { %v980_v60 = vld [vmem:[#allocation7 + $0x30] sm:$0xff]   ;;  %v984_v0 = vld [vmem:[#allocation7 + $0x38] sm:$0xff]  }
  0x4d   :  { %v981_v61 = vld [vmem:[#allocation7 + $0xb0] sm:$0xff]   ;;  %v985_v1 = vld [vmem:[#allocation7 + $0xb8] sm:$0xff]  }
  0x4e   :  { %302 = vmatpush1.bf16.msra.mxu0 %v939_v23  ;;  %345 = vmatpush1.bf16.msra.mxu1 %v940_v24  ;;  %v103_v6 = vld [vmem:[%s1201_s2] sm:$0xf] }
  0x4f   :  { %303 = vmatprep.subr.bf16.mxu0 %v941_v25  ;;  %346 = vmatprep.subr.bf16.mxu1 %v943_v26  ;;  %v108_v9 = vrot.slane %v103_v6, %v107_v4  ;;  %v116_v10 = vrot.slane %v103_v6, %v115_v5  ;;  %v112_v11 = vrot.slane %v103_v6, %v111_v7  ;;  %v848_v2 = vld [vmem:[%s1204_s5] ss:$0 sm:$0xff] }
  0x50   :  { %v120_v12 = vrot.slane %v103_v6, %v119_v8  ;;  %v849_v4 = vld [vmem:[%s1205_s6] ss:$0 sm:$0xff] }
  0x52   :  { %304 = vmatpush1.bf16.msra.mxu0 %v945_v27  ;;  %347 = vmatpush1.bf16.msra.mxu1 %v946_v28 }
  0x53   :  { %305 = vmatprep.subr.bf16.mxu0 %v947_v29  ;;  %348 = vmatprep.subr.bf16.mxu1 %v949_v30 }
  0x56   :  { %306 = vmatpush1.bf16.msra.mxu0 %v951_v31  ;;  %349 = vmatpush1.bf16.msra.mxu1 %v952_v32 }
  0x57   :  { %850 = vmatprep.subr.bf16.mxu0 %v954_v33  ;;  %872 = vmatprep.subr.bf16.mxu1 %v955_v35 }
  0x59   :  { %324 = vmatmul.mubr.bf16.vlgmr.msra.gmra.mrb[0].mxu0 %v953_v34  ;;  %367 = vmatmul.mubr.bf16.vlgmr.msra.gmra.mrb[0].mxu1 %v953_v34 }
  0x5a   :  { %851 = vmatpush3.bf16.msra.mxu0 %v956_v36  ;;  %873 = vmatpush3.bf16.msra.mxu1 %v957_v37 }
  0x5b   :  { %852 = vmatprep.subr.bf16.mxu0 %v958_v38  ;;  %874 = vmatprep.subr.bf16.mxu1 %v959_v39 }
  0x5e   :  { %853 = vmatpush3.bf16.msra.mxu0 %v960_v40  ;;  %875 = vmatpush3.bf16.msra.mxu1 %v961_v41 }
  0x5f   :  { %854 = vmatprep.subr.bf16.mxu0 %v962_v42  ;;  %876 = vmatprep.subr.bf16.mxu1 %v963_v43  ;;  %v815_v43 = vld [vmem:[%s1203_s4] ss:$0 sm:$0xff] }
  0x62   :  { %855 = vmatpush3.bf16.msra.mxu0 %v964_v44  ;;  %877 = vmatpush3.bf16.msra.mxu1 %v965_v45 }
  0x63   :  { %856 = vmatprep.subr.bf16.mxu0 %v966_v46  ;;  %878 = vmatprep.subr.bf16.mxu1 %v967_v47 }
  0x66   :  { %857 = vmatpush3.bf16.msra.mxu0 %v968_v48  ;;  %879 = vmatpush3.bf16.msra.mxu1 %v969_v49 }
  0x67   :  { %858 = vmatprep.subr.bf16.mxu0 %v970_v50  ;;  %880 = vmatprep.subr.bf16.mxu1 %v971_v51 }
  0x6a   :  { %859 = vmatpush3.bf16.msra.mxu0 %v972_v52  ;;  %881 = vmatpush3.bf16.msra.mxu1 %v973_v53 }
  0x6b   :  { %860 = vmatprep.subr.bf16.mxu0 %v974_v54  ;;  %882 = vmatprep.subr.bf16.mxu1 %v975_v55 }
  0x6e   :  { %861 = vmatpush3.bf16.msra.mxu0 %v976_v56  ;;  %883 = vmatpush3.bf16.msra.mxu1 %v977_v57 }
  0x6f   :  { %862 = vmatprep.subr.bf16.mxu0 %v978_v58  ;;  %884 = vmatprep.subr.bf16.mxu1 %v979_v59 }
  0x72   :  { %863 = vmatpush3.bf16.msra.mxu0 %v980_v60  ;;  %885 = vmatpush3.bf16.msra.mxu1 %v981_v61 }
  0x73   :  { %864 = vmatprep.subr.bf16.mxu0 %v982_v62  ;;  %886 = vmatprep.subr.bf16.mxu1 %v983_v63 }
  0x76   :  { %865 = vmatpush3.bf16.msra.mxu0 %v984_v0  ;;  %887 = vmatpush3.bf16.msra.mxu1 %v985_v1 }
 0x12c   :  { %v325_v13 = vpop.f32.mrb[0].mxu0  ;;  %v368_v14 = vpop.f32.mrb[0].mxu1 }
 0x12d   :  { %v326_v15 = vadd.f32 %v325_v13, %v108_v9  ;;  %v369_v16 = vadd.f32 %v368_v14, %v116_v10  ;;  %v327_v17 = vpop.f32.mrb[1].mxu0  ;;  %v370_v18 = vpop.f32.mrb[1].mxu1 }
 0x12e   :  { %v328_v19 = vadd.f32 %v327_v17, %v112_v11  ;;  %v371_v20 = vadd.f32 %v370_v18, %v120_v12  ;;  %v329_v21 = vpop.f32.mrb[2].mxu0  ;;  %v372_v22 = vpop.f32.mrb[2].mxu1 }
 0x12f   :  { %v379_v23 = vmax.f32 %v369_v16, 0.0  ;;  %v330_v24 = vadd.f32 %v329_v21, %v108_v9  ;;  %v373_v25 = vadd.f32 %v372_v22, %v116_v10  ;;  %v331_v26 = vpop.f32.mrb[3].mxu0  ;;  %v374_v27 = vpop.f32.mrb[3].mxu1  ;;  %v377_v31 = vmax.f32 %v326_v15, 0.0 }
 0x130   :  { %v380_v28 = vmax.f32 %v371_v20, 0.0  ;;  %v332_v29 = vadd.f32 %v331_v26, %v112_v11  ;;  %v375_v30 = vadd.f32 %v374_v27, %v120_v12  ;;  %v378_v34 = vmax.f32 %v328_v19, 0.0 }
 0x131   :  { %v381_v32 = vmax.f32 %v330_v24, 0.0  ;;  %v383_v33 = vmax.f32 %v373_v25, 0.0 }
 0x132   :  { %v382_v35 = vmax.f32 %v332_v29, 0.0  ;;  %v384_v36 = vmax.f32 %v375_v30, 0.0 }
 0x133   :  { %v385_v37 = vpack.c.bf16 %v381_v32, %v377_v31  ;;  %v387_v38 = vpack.c.bf16 %v383_v33, %v379_v23 }
 0x134   :  { %v386_v39 = vpack.c.bf16 %v382_v35, %v378_v34  ;;  %v388_v40 = vpack.c.bf16 %v384_v36, %v380_v28 }
 0x136   :  { %684 = vmatprep.mubr.bf16.mxu0 %v386_v39  ;;  %725 = vmatprep.mubr.bf16.mxu1 %v388_v40 }
 0x137   :  { %685 = vmatmul.mubr.bf16.vlgmr.msra.gmra.mrb[4].mxu0 %v385_v37  ;;  %726 = vmatmul.mubr.bf16.vlgmr.msra.gmra.mrb[4].mxu1 %v387_v38 }
 0x20a   :  { %v866_v41 = vpop.f32.mrb[4].mxu0  ;;  %v888_v42 = vpop.f32.mrb[4].mxu1 }
 0x20b   :  { %v867_v44 = vpop.f32.mrb[5].mxu0  ;;  %v889_v45 = vpop.f32.mrb[5].mxu1 }
 0x20c   :  { %v868_v46 = vadd.f32 %v867_v44, %v866_v41  ;;  %v890_v47 = vadd.f32 %v889_v45, %v888_v42  ;;  %v869_v48 = vpop.f32.mrb[6].mxu0  ;;  %v891_v49 = vpop.f32.mrb[6].mxu1 }
 0x20d   :  { %v870_v50 = vpop.f32.mrb[7].mxu0  ;;  %v892_v51 = vpop.f32.mrb[7].mxu1 }
 0x20e   :  { %v687_v52 = vadd.f32 %v868_v46, %v815_v43  ;;  %v871_v53 = vadd.f32 %v870_v50, %v869_v48  ;;  %v893_v54 = vadd.f32 %v892_v51, %v891_v49 }
 0x210   :  { %v728_v55 = vadd.f32 %v890_v47, %v687_v52  ;;  %v690_v56 = vadd.f32 %v871_v53, %v815_v43 }
 0x212   :  { %v734_v57 = vsub.f32 0.0, %v728_v55  ;;  %v731_v58 = vadd.f32 %v893_v54, %v690_v56 }
 0x214   :  { %v736_v59 = vmul.f32 1.442695, %v734_v57  ;;  %v735_v60 = vsub.f32 0.0, %v731_v58 }
 0x216   :  { %986 = vpow2.f32 %v736_v59  ;;  %v738_v61 = vmul.f32 1.442695, %v735_v60 }
 0x218   :  { %988 = vpow2.f32 %v738_v61 }
 0x220   :  { %v987_v62 = vpop.eup %986 }
 0x221   :  { %v740_v63 = vadd.f32 1.0, %v987_v62 }
 0x222   :  { %v989_v0 = vpop.eup %988 }
 0x223   :  { %990 = vrcp.f32 %v740_v63  ;;  %v741_v1 = vadd.f32 1.0, %v989_v0 }
 0x225   :  { %992 = vrcp.f32 %v741_v1 }
 0x22d   :  { %v991_v3 = vpop.eup %990 }
 0x22e   :  { %v751_v5 = vmul.f32 %v991_v3, %v848_v2 }
 0x22f   :  { %v993_v6 = vpop.eup %992 }
 0x230   :  { %v752_v7 = vmul.f32 %v993_v6, %v848_v2  ;;  %v760_v8 = vadd.f32 %v849_v4, %v751_v5 }
 0x232   :  { %v761_v9 = vadd.f32 %v849_v4, %v752_v7  ;;  %762 = vst [vmem:[#allocation8] sm:$0xff] %v760_v8 }
 0x234   :  { %763 = vst [vmem:[#allocation8 + $0x8] sm:$0xff] %v761_v9 }
 0x235   :  { %1071 = shalt.err (!%p1068_p0)
}
 0x236   :  { %s1072_s6 = scalar_lea.hbm %s1206_s7, 256 }
 0x237   :  { %p1073_p1 = scmp.ne.s32.totalorder %s1206_s7, %s1072_s6  ;;  %p1076_p2 = scmp.lt.u32.totalorder %s1072_s6, %s1206_s7 }
 0x239   :  { %p1078_p3 = pnand %p1076_p2, %p1073_p1 }
 0x23b   :  { %1081 = shalt.err (!%p1078_p3)
}
 0x23c   :  { %s1097_s28 = smov 128   ;;  %s1098_s29 = smov 8  }
 0x23d   :  { %775 = dma.vmem_to_hbm [thread:$0]  %s770_s22, 256, %s1206_s7, [#allocation4], %s1097_s28, %s1097_s28, %s1098_s29  }
 0x23e   :  { %1086 = dma.done.wait [#allocation4], 256  }
 0x23f   :  { %1087 = vsyncadd [#allocation4], 4294967040 }
 0x240   :  { %779 = vsyncpa [#allocation3], 1 }
 0x241   :  { %780 = vsyncpa [#allocation6], 1 }
 0x242   :  { %781 = vsyncpa [#allocation4], 1 }

</bundles_post_ra>
